<compile_context>
chip_gen: v7x
topology: tpu7x:2x2x1
jax: 0.10.0
libtpu: 0.0.40
codegen_flags: <defaults>
</compile_context>

<pallas_src>
import functools

import jax
import jax.numpy as jnp
import numpy as np
from jax import lax
from jax.experimental import pallas as pl
from jax.experimental.pallas import tpu as pltpu


# ----------------------------------------------------------------------------
# Fused Pallas kernel
# ----------------------------------------------------------------------------
def fused_self_attention_kernel(
    x_ref, wqkv_ref, wfc_ref, bfc_ref, wo_ref, bo_ref,   # inputs
    o_ref,                                               # output
    merged_ref,                                          # VMEM scratch (B*n, H*d_v)
    *, batch, n, n_head, d_k, d_v, inv_scale):
    H = n_head
    x = x_ref[...]                                       # (B*n, d_x)

    # q0 | k0 | v0 = x @ [wq | wk | wv]                  (fused, no bias)
    qkv0 = jnp.dot(x, wqkv_ref[...], preferred_element_type=jnp.float32)

    # fc_q | fc_k | fc_v as one block-diagonal matmul + fused bias
    qkv = (jnp.dot(qkv0, wfc_ref[...], preferred_element_type=jnp.float32)
           + bfc_ref[...])                               # (B*n, H*(2*d_k+d_v))

    q_off, k_off, v_off = 0, H * d_k, 2 * H * d_k

    # Per-(head, batch) scaled dot-product attention; H*B is tiny -> static unroll.
    for h in range(H):
        for b in range(batch):
            r0, r1 = b * n, (b + 1) * n
            q_hb = qkv[r0:r1, q_off + h * d_k: q_off + (h + 1) * d_k]   # (n, d_k)
            k_hb = qkv[r0:r1, k_off + h * d_k: k_off + (h + 1) * d_k]   # (n, d_k)
            v_hb = qkv[r0:r1, v_off + h * d_v: v_off + (h + 1) * d_v]   # (n, d_v)

            # scores = q @ k^T * (1/sqrt(d_k))  -- contraction, no explicit transpose
            s = lax.dot_general(q_hb, k_hb, (((1,), (1,)), ((), ())),
                                preferred_element_type=jnp.float32) * inv_scale
            s = s - jnp.max(s, axis=-1, keepdims=True)
            p = jnp.exp(s)
            p = p * pl.reciprocal(jnp.sum(p, axis=-1, keepdims=True), approx=True)
            o_hb = jnp.dot(p, v_hb, preferred_element_type=jnp.float32) # (n, d_v)

            # merge heads: matches permute(1,2,0,3).view(batch, n, H*d_v)
            merged_ref[r0:r1, h * d_v:(h + 1) * d_v] = o_hb

    # fc_o
    out = (jnp.dot(merged_ref[...], wo_ref[...], preferred_element_type=jnp.float32)
           + bo_ref[...])
    o_ref[...] = out.astype(o_ref.dtype)


# ----------------------------------------------------------------------------
# Wrapper: builds fused weights, single pallas_call
# ----------------------------------------------------------------------------
def self_attention_forward(params, x):
    """Reproduces SelfAttention.forward(x, mask=None). x: (batch, n, d_x)."""
    batch, n, d_x = x.shape
    H, d_k, d_v, d_o = params["n_head"], params["d_k"], params["d_v"], params["d_o"]
    dtype = x.dtype

    # Fused first projection: [wq | wk | wv]  -> (d_x, 2*d_k + d_v)
    w_qkv = jnp.concatenate([params["wq"], params["wk"], params["wv"]], axis=1)

    # Fused fc_q/fc_k/fc_v as a block-diagonal matrix (PyTorch Linear: y = x @ W^T + b)
    d_in = 2 * d_k + d_v
    d_mid = H * (2 * d_k + d_v)
    w_fc = jnp.zeros((d_in, d_mid), dtype)
    w_fc = w_fc.at[0:d_k,              0:H * d_k].set(params["fc_q_w"].T)
    w_fc = w_fc.at[d_k:2 * d_k,        H * d_k:2 * H * d_k].set(params["fc_k_w"].T)
    w_fc = w_fc.at[2 * d_k:2 * d_k + d_v,
                   2 * H * d_k:2 * H * d_k + H * d_v].set(params["fc_v_w"].T)
    b_fc = jnp.concatenate(
        [params["fc_q_b"], params["fc_k_b"], params["fc_v_b"]]).reshape(1, d_mid)

    w_o = params["fc_o_w"].T                 # (H*d_v, d_o)
    b_o = params["fc_o_b"].reshape(1, d_o)

    x2d = x.reshape(batch * n, d_x)
    inv_scale = 1.0 / float(np.sqrt(d_k))

    kern = functools.partial(
        fused_self_attention_kernel,
        batch=batch, n=n, n_head=H, d_k=d_k, d_v=d_v, inv_scale=inv_scale)

    out = pl.pallas_call(
        kern,
        out_shape=jax.ShapeDtypeStruct((batch * n, d_o), dtype),
        scratch_shapes=[pltpu.VMEM((batch * n, H * d_v), jnp.float32)],
    )(x2d, w_qkv, w_fc, b_fc, w_o, b_o)

    return out.reshape(batch, n, d_o)


# ----------------------------------------------------------------------------
# Deterministic parameter init (mirrors SelfAttention.init_parameters: U(-s, s),
# s = 1/sqrt(param.shape[-1]))
# ----------------------------------------------------------------------------
def init_params(key, n_head, d_k, d_v, d_x, d_o, dtype=jnp.float32):
    def uniform(key, shape):
        stdv = 1.0 / np.sqrt(shape[-1])
        return jax.random.uniform(key, shape, dtype, minval=-stdv, maxval=stdv)

    keys = jax.random.split(key, 11)
    return {
        "n_head": n_head, "d_k": d_k, "d_v": d_v, "d_o": d_o,
        "wq": uniform(keys[0], (d_x, d_k)),
        "wk": uniform(keys[1], (d_x, d_k)),
        "wv": uniform(keys[2], (d_x, d_v)),
        # PyTorch Linear weights are (out_features, in_features)
        "fc_q_w": uniform(keys[3], (n_head * d_k, d_k)),
        "fc_q_b": uniform(keys[4], (n_head * d_k,)),
        "fc_k_w": uniform(keys[5], (n_head * d_k, d_k)),
        "fc_k_b": uniform(keys[6], (n_head * d_k,)),
        "fc_v_w": uniform(keys[7], (n_head * d_v, d_v)),
        "fc_v_b": uniform(keys[8], (n_head * d_v,)),
        "fc_o_w": uniform(keys[9], (d_o, n_head * d_v)),
        "fc_o_b": uniform(keys[10], (d_o,)),
    }


# ----------------------------------------------------------------------------
# Pure-JAX reference for verification
# ----------------------------------------------------------------------------
def reference_forward(params, x):
    batch, n, d_x = x.shape
    H, d_k, d_v = params["n_head"], params["d_k"], params["d_v"]
    q = x @ params["wq"]
    k = x @ params["wk"]
    v = x @ params["wv"]
    q = q @ params["fc_q_w"].T + params["fc_q_b"]
    k = k @ params["fc_k_w"].T + params["fc_k_b"]
    v = v @ params["fc_v_w"].T + params["fc_v_b"]
    q = q.reshape(batch, n, H, d_k).transpose(2, 0, 1, 3).reshape(H * batch, n, d_k)
    k = k.reshape(batch, n, H, d_k).transpose(2, 0, 1, 3).reshape(H * batch, n, d_k)
    v = v.reshape(batch, n, H, d_v).transpose(2, 0, 1, 3).reshape(H * batch, n, d_v)
    u = jnp.einsum("bqd,bkd->bqk", q, k) / np.power(d_k, 0.5)
    attn = jax.nn.softmax(u, axis=-1)
    out = jnp.einsum("bqk,bkd->bqd", attn, v)
    out = out.reshape(H, batch, n, d_v).transpose(1, 2, 0, 3).reshape(batch, n, H * d_v)
    out = out @ params["fc_o_w"].T + params["fc_o_b"]
    return out


if __name__ == "__main__":
    n_head, d_k, d_v, d_x, d_o = 2, 16, 16, 32, 32
    batch, seq = 2, 8

    key = jax.random.PRNGKey(0)
    pkey, xkey = jax.random.split(key)
    params = init_params(pkey, n_head, d_k, d_v, d_x, d_o)
    x = jax.random.normal(xkey, (batch, seq, d_x), dtype=jnp.float32)

    out = self_attention_forward(params, x)
    out = jax.block_until_ready(out)

    ref = reference_forward(params, x)
    assert out.shape == (batch, seq, d_o), out.shape
    np.testing.assert_allclose(np.asarray(out), np.asarray(ref), rtol=1e-2, atol=1e-2)

    print("KERNEL_OK")
</pallas_src>

<mosaic_0001>
module attributes {stable_mosaic.version = 11 : i64} {
  func.func @fused_self_attention_kernel(%arg0: memref<16x32xf32, #tpu.memory_space<vmem>>, %arg1: memref<32x48xf32, #tpu.memory_space<vmem>>, %arg2: memref<48x96xf32, #tpu.memory_space<vmem>>, %arg3: memref<1x96xf32, #tpu.memory_space<vmem>>, %arg4: memref<32x32xf32, #tpu.memory_space<vmem>>, %arg5: memref<1x32xf32, #tpu.memory_space<vmem>>, %arg6: memref<16x32xf32, #tpu.memory_space<vmem>>, %arg7: memref<16x32xf32, #tpu.memory_space<vmem>>) attributes {dimension_semantics = [], scalar_prefetch = 0 : i64, scratch_operands = 1 : i64, tpu.core_type = #tpu.core_type<tc>} {
    %c0 = arith.constant 0 : index
    %c0_0 = arith.constant 0 : index
    %0 = vector.load %arg0[%c0, %c0_0] : memref<16x32xf32, #tpu.memory_space<vmem>>, vector<16x32xf32>
    %c0_1 = arith.constant 0 : index
    %c0_2 = arith.constant 0 : index
    %1 = vector.load %arg1[%c0_1, %c0_2] : memref<32x48xf32, #tpu.memory_space<vmem>>, vector<32x48xf32>
    %cst = arith.constant dense<0.000000e+00> : vector<16x48xf32>
    %2 = tpu.matmul %0, %1, %cst {dimension_numbers = #tpu.dot_dimension_numbers<[1], [0], [0], [1], [0, 0, 1, 1], [], []>} : vector<16x32xf32>, vector<32x48xf32>, vector<16x48xf32> -> vector<16x48xf32>
    %c0_3 = arith.constant 0 : index
    %c0_4 = arith.constant 0 : index
    %3 = vector.load %arg2[%c0_3, %c0_4] : memref<48x96xf32, #tpu.memory_space<vmem>>, vector<48x96xf32>
    %cst_5 = arith.constant dense<0.000000e+00> : vector<16x96xf32>
    %4 = tpu.matmul %2, %3, %cst_5 {dimension_numbers = #tpu.dot_dimension_numbers<[1], [0], [0], [1], [0, 0, 1, 1], [], []>} : vector<16x48xf32>, vector<48x96xf32>, vector<16x96xf32> -> vector<16x96xf32>
    %c0_6 = arith.constant 0 : index
    %c0_7 = arith.constant 0 : index
    %5 = vector.load %arg3[%c0_6, %c0_7] : memref<1x96xf32, #tpu.memory_space<vmem>>, vector<1x96xf32>
    %6 = vector.broadcast %5 : vector<1x96xf32> to vector<16x96xf32>
    %7 = arith.addf %4, %6 : vector<16x96xf32>
    %8 = vector.extract_strided_slice %7 {offsets = [0, 0], sizes = [8, 16], strides = [1, 1]} : vector<16x96xf32> to vector<8x16xf32>
    %9 = vector.extract_strided_slice %7 {offsets = [0, 32], sizes = [8, 16], strides = [1, 1]} : vector<16x96xf32> to vector<8x16xf32>
    %10 = vector.extract_strided_slice %7 {offsets = [0, 64], sizes = [8, 16], strides = [1, 1]} : vector<16x96xf32> to vector<8x16xf32>
    %cst_8 = arith.constant dense<0.000000e+00> : vector<8x8xf32>
    %11 = tpu.matmul %8, %9, %cst_8 {dimension_numbers = #tpu.dot_dimension_numbers<[1], [1], [0], [0], [0, 0, 1, 0], [], []>} : vector<8x16xf32>, vector<8x16xf32>, vector<8x8xf32> -> vector<8x8xf32>
    %cst_9 = arith.constant 2.500000e-01 : f32
    %12 = vector.broadcast %cst_9 : f32 to vector<8x8xf32>
    %13 = arith.mulf %11, %12 : vector<8x8xf32>
    %cst_10 = arith.constant dense<0xFF800000> : vector<8xf32>
    %14 = vector.multi_reduction <maximumf>, %13, %cst_10 [1] : vector<8x8xf32> to vector<8xf32>
    %15 = vector.shape_cast %14 : vector<8xf32> to vector<8x1xf32>
    %16 = vector.broadcast %15 : vector<8x1xf32> to vector<8x8xf32>
    %17 = arith.subf %13, %16 : vector<8x8xf32>
    %18 = math.exp %17 : vector<8x8xf32>
    %cst_11 = arith.constant dense<0.000000e+00> : vector<8xf32>
    %19 = vector.multi_reduction <add>, %18, %cst_11 [1] : vector<8x8xf32> to vector<8xf32>
    %20 = vector.shape_cast %19 : vector<8xf32> to vector<8x1xf32>
    %21 = tpu.reciprocal %20 {approx = true} : vector<8x1xf32> -> vector<8x1xf32>
    %22 = vector.broadcast %21 : vector<8x1xf32> to vector<8x8xf32>
    %23 = arith.mulf %18, %22 : vector<8x8xf32>
    %cst_12 = arith.constant dense<0.000000e+00> : vector<8x16xf32>
    %24 = tpu.matmul %23, %10, %cst_12 {dimension_numbers = #tpu.dot_dimension_numbers<[1], [0], [0], [1], [0, 0, 1, 1], [], []>} : vector<8x8xf32>, vector<8x16xf32>, vector<8x16xf32> -> vector<8x16xf32>
    %c0_13 = arith.constant 0 : index
    %c0_14 = arith.constant 0 : index
    %25 = vector.load %arg7[%c0_13, %c0_14] : memref<16x32xf32, #tpu.memory_space<vmem>>, vector<8x16xf32>
    tpu.vector_store %arg7[%c0_13, %c0_14], %24 {strides = array<i32>} : memref<16x32xf32, #tpu.memory_space<vmem>>, vector<8x16xf32>,
    %26 = vector.extract_strided_slice %7 {offsets = [8, 0], sizes = [8, 16], strides = [1, 1]} : vector<16x96xf32> to vector<8x16xf32>
    %27 = vector.extract_strided_slice %7 {offsets = [8, 32], sizes = [8, 16], strides = [1, 1]} : vector<16x96xf32> to vector<8x16xf32>
    %28 = vector.extract_strided_slice %7 {offsets = [8, 64], sizes = [8, 16], strides = [1, 1]} : vector<16x96xf32> to vector<8x16xf32>
    %cst_15 = arith.constant dense<0.000000e+00> : vector<8x8xf32>
    %29 = tpu.matmul %26, %27, %cst_15 {dimension_numbers = #tpu.dot_dimension_numbers<[1], [1], [0], [0], [0, 0, 1, 0], [], []>} : vector<8x16xf32>, vector<8x16xf32>, vector<8x8xf32> -> vector<8x8xf32>
    %cst_16 = arith.constant 2.500000e-01 : f32
    %30 = vector.broadcast %cst_16 : f32 to vector<8x8xf32>
    %31 = arith.mulf %29, %30 : vector<8x8xf32>
    %cst_17 = arith.constant dense<0xFF800000> : vector<8xf32>
    %32 = vector.multi_reduction <maximumf>, %31, %cst_17 [1] : vector<8x8xf32> to vector<8xf32>
    %33 = vector.shape_cast %32 : vector<8xf32> to vector<8x1xf32>
    %34 = vector.broadcast %33 : vector<8x1xf32> to vector<8x8xf32>
    %35 = arith.subf %31, %34 : vector<8x8xf32>
    %36 = math.exp %35 : vector<8x8xf32>
    %cst_18 = arith.constant dense<0.000000e+00> : vector<8xf32>
    %37 = vector.multi_reduction <add>, %36, %cst_18 [1] : vector<8x8xf32> to vector<8xf32>
    %38 = vector.shape_cast %37 : vector<8xf32> to vector<8x1xf32>
    %39 = tpu.reciprocal %38 {approx = true} : vector<8x1xf32> -> vector<8x1xf32>
    %40 = vector.broadcast %39 : vector<8x1xf32> to vector<8x8xf32>
    %41 = arith.mulf %36, %40 : vector<8x8xf32>
    %cst_19 = arith.constant dense<0.000000e+00> : vector<8x16xf32>
    %42 = tpu.matmul %41, %28, %cst_19 {dimension_numbers = #tpu.dot_dimension_numbers<[1], [0], [0], [1], [0, 0, 1, 1], [], []>} : vector<8x8xf32>, vector<8x16xf32>, vector<8x16xf32> -> vector<8x16xf32>
    %c8 = arith.constant 8 : index
    %c0_20 = arith.constant 0 : index
    %43 = vector.load %arg7[%c8, %c0_20] : memref<16x32xf32, #tpu.memory_space<vmem>>, vector<8x16xf32>
    tpu.vector_store %arg7[%c8, %c0_20], %42 {strides = array<i32>} : memref<16x32xf32, #tpu.memory_space<vmem>>, vector<8x16xf32>,
    %44 = vector.extract_strided_slice %7 {offsets = [0, 16], sizes = [8, 16], strides = [1, 1]} : vector<16x96xf32> to vector<8x16xf32>
    %45 = vector.extract_strided_slice %7 {offsets = [0, 48], sizes = [8, 16], strides = [1, 1]} : vector<16x96xf32> to vector<8x16xf32>
    %46 = vector.extract_strided_slice %7 {offsets = [0, 80], sizes = [8, 16], strides = [1, 1]} : vector<16x96xf32> to vector<8x16xf32>
    %cst_21 = arith.constant dense<0.000000e+00> : vector<8x8xf32>
    %47 = tpu.matmul %44, %45, %cst_21 {dimension_numbers = #tpu.dot_dimension_numbers<[1], [1], [0], [0], [0, 0, 1, 0], [], []>} : vector<8x16xf32>, vector<8x16xf32>, vector<8x8xf32> -> vector<8x8xf32>
    %cst_22 = arith.constant 2.500000e-01 : f32
    %48 = vector.broadcast %cst_22 : f32 to vector<8x8xf32>
    %49 = arith.mulf %47, %48 : vector<8x8xf32>
    %cst_23 = arith.constant dense<0xFF800000> : vector<8xf32>
    %50 = vector.multi_reduction <maximumf>, %49, %cst_23 [1] : vector<8x8xf32> to vector<8xf32>
    %51 = vector.shape_cast %50 : vector<8xf32> to vector<8x1xf32>
    %52 = vector.broadcast %51 : vector<8x1xf32> to vector<8x8xf32>
    %53 = arith.subf %49, %52 : vector<8x8xf32>
    %54 = math.exp %53 : vector<8x8xf32>
    %cst_24 = arith.constant dense<0.000000e+00> : vector<8xf32>
    %55 = vector.multi_reduction <add>, %54, %cst_24 [1] : vector<8x8xf32> to vector<8xf32>
    %56 = vector.shape_cast %55 : vector<8xf32> to vector<8x1xf32>
    %57 = tpu.reciprocal %56 {approx = true} : vector<8x1xf32> -> vector<8x1xf32>
    %58 = vector.broadcast %57 : vector<8x1xf32> to vector<8x8xf32>
    %59 = arith.mulf %54, %58 : vector<8x8xf32>
    %cst_25 = arith.constant dense<0.000000e+00> : vector<8x16xf32>
    %60 = tpu.matmul %59, %46, %cst_25 {dimension_numbers = #tpu.dot_dimension_numbers<[1], [0], [0], [1], [0, 0, 1, 1], [], []>} : vector<8x8xf32>, vector<8x16xf32>, vector<8x16xf32> -> vector<8x16xf32>
    %c0_26 = arith.constant 0 : index
    %c16 = arith.constant 16 : index
    %61 = vector.load %arg7[%c0_26, %c16] : memref<16x32xf32, #tpu.memory_space<vmem>>, vector<8x16xf32>
    tpu.vector_store %arg7[%c0_26, %c16], %60 {strides = array<i32>} : memref<16x32xf32, #tpu.memory_space<vmem>>, vector<8x16xf32>,
    %62 = vector.extract_strided_slice %7 {offsets = [8, 16], sizes = [8, 16], strides = [1, 1]} : vector<16x96xf32> to vector<8x16xf32>
    %63 = vector.extract_strided_slice %7 {offsets = [8, 48], sizes = [8, 16], strides = [1, 1]} : vector<16x96xf32> to vector<8x16xf32>
    %64 = vector.extract_strided_slice %7 {offsets = [8, 80], sizes = [8, 16], strides = [1, 1]} : vector<16x96xf32> to vector<8x16xf32>
    %cst_27 = arith.constant dense<0.000000e+00> : vector<8x8xf32>
    %65 = tpu.matmul %62, %63, %cst_27 {dimension_numbers = #tpu.dot_dimension_numbers<[1], [1], [0], [0], [0, 0, 1, 0], [], []>} : vector<8x16xf32>, vector<8x16xf32>, vector<8x8xf32> -> vector<8x8xf32>
    %cst_28 = arith.constant 2.500000e-01 : f32
    %66 = vector.broadcast %cst_28 : f32 to vector<8x8xf32>
    %67 = arith.mulf %65, %66 : vector<8x8xf32>
    %cst_29 = arith.constant dense<0xFF800000> : vector<8xf32>
    %68 = vector.multi_reduction <maximumf>, %67, %cst_29 [1] : vector<8x8xf32> to vector<8xf32>
    %69 = vector.shape_cast %68 : vector<8xf32> to vector<8x1xf32>
    %70 = vector.broadcast %69 : vector<8x1xf32> to vector<8x8xf32>
    %71 = arith.subf %67, %70 : vector<8x8xf32>
    %72 = math.exp %71 : vector<8x8xf32>
    %cst_30 = arith.constant dense<0.000000e+00> : vector<8xf32>
    %73 = vector.multi_reduction <add>, %72, %cst_30 [1] : vector<8x8xf32> to vector<8xf32>
    %74 = vector.shape_cast %73 : vector<8xf32> to vector<8x1xf32>
    %75 = tpu.reciprocal %74 {approx = true} : vector<8x1xf32> -> vector<8x1xf32>
    %76 = vector.broadcast %75 : vector<8x1xf32> to vector<8x8xf32>
    %77 = arith.mulf %72, %76 : vector<8x8xf32>
    %cst_31 = arith.constant dense<0.000000e+00> : vector<8x16xf32>
    %78 = tpu.matmul %77, %64, %cst_31 {dimension_numbers = #tpu.dot_dimension_numbers<[1], [0], [0], [1], [0, 0, 1, 1], [], []>} : vector<8x8xf32>, vector<8x16xf32>, vector<8x16xf32> -> vector<8x16xf32>
    %c8_32 = arith.constant 8 : index
    %c16_33 = arith.constant 16 : index
    %79 = vector.load %arg7[%c8_32, %c16_33] : memref<16x32xf32, #tpu.memory_space<vmem>>, vector<8x16xf32>
    tpu.vector_store %arg7[%c8_32, %c16_33], %78 {strides = array<i32>} : memref<16x32xf32, #tpu.memory_space<vmem>>, vector<8x16xf32>,
    %c0_34 = arith.constant 0 : index
    %c0_35 = arith.constant 0 : index
    %80 = vector.load %arg7[%c0_34, %c0_35] : memref<16x32xf32, #tpu.memory_space<vmem>>, vector<16x32xf32>
    %c0_36 = arith.constant 0 : index
    %c0_37 = arith.constant 0 : index
    %81 = vector.load %arg4[%c0_36, %c0_37] : memref<32x32xf32, #tpu.memory_space<vmem>>, vector<32x32xf32>
    %cst_38 = arith.constant dense<0.000000e+00> : vector<16x32xf32>
    %82 = tpu.matmul %80, %81, %cst_38 {dimension_numbers = #tpu.dot_dimension_numbers<[1], [0], [0], [1], [0, 0, 1, 1], [], []>} : vector<16x32xf32>, vector<32x32xf32>, vector<16x32xf32> -> vector<16x32xf32>
    %c0_39 = arith.constant 0 : index
    %c0_40 = arith.constant 0 : index
    %83 = vector.load %arg5[%c0_39, %c0_40] : memref<1x32xf32, #tpu.memory_space<vmem>>, vector<1x32xf32>
    %84 = vector.broadcast %83 : vector<1x32xf32> to vector<16x32xf32>
    %85 = arith.addf %82, %84 : vector<16x32xf32>
    %c0_41 = arith.constant 0 : index
    %c0_42 = arith.constant 0 : index
    %86 = vector.load %arg6[%c0_41, %c0_42] : memref<16x32xf32, #tpu.memory_space<vmem>>, vector<16x32xf32>
    tpu.vector_store %arg6[%c0_41, %c0_42], %85 {strides = array<i32>} : memref<16x32xf32, #tpu.memory_space<vmem>>, vector<16x32xf32>,
    return
  }
}

</mosaic_0001>

<bundles_post_ra>
// kernel: tpu_custom_call.1
= control target key start
LH: loop header
LB: loop body
LE: loop exit
PB: predicated region body
PF: predicated region fallthrough
CT: control target
= control target key end

     0   :  { %11 = vsyncpa [#allocation4], 0  ;;  %s1579_s0 = inlined_call_operand.hbm [shape: f32[16,32], index: 0, kind: input, shape index: {}]   ;;  %s1580_s1 = inlined_call_operand.hbm [shape: f32[32,48], index: 1, kind: input, shape index: {}]   ;;  %s1581_s2 = inlined_call_operand.hbm [shape: f32[48,96], index: 2, kind: input, shape index: {}]   ;;  %s1582_s3 = inlined_call_operand.vmem [shape: f32[1,96], index: 3, kind: input, shape index: {}]   ;;  %s1583_s4 = inlined_call_operand.hbm [shape: f32[32,32], index: 4, kind: input, shape index: {}]   ;;  %s1584_s5 = inlined_call_operand.vmem [shape: f32[1,32], index: 5, kind: input, shape index: {}]   ;;  %s1585_s6 = inlined_call_operand.hbm [shape: f32[16,32], index: 6, kind: output, shape index: {}]  }
   0x1   :  { %12 = vsyncpa [#allocation7], 0 }
   0x2   :  { %13 = vsyncpa [#allocation10], 0 }
   0x3   :  { %14 = vsyncpa [#allocation5], 0  ;;  %s1364_s21 = smov [#allocation6]   ;;  %s1365_s23 = smov [#allocation3]  }
   0x4   :  { %s32_s22 = sshll.u32 %s1364_s21, 4  ;;  %s20_s24 = sshll.u32 %s1365_s23, 4  ;;  %s33_s22 = int_to_ptr.vmem [resolvable:$true] %s32_s22  ;;  %s1414_s24 = int_to_ptr.vmem [resolvable:$true] %s20_s24 }
   0x5   :  { %s1246_s27 = scalar_lea.hbm %s1580_s1, 512 }
   0x6   :  { %p1247_p0 = scmp.ne.s32.totalorder %s1580_s1, %s1246_s27  ;;  %p1250_p1 = scmp.lt.u32.totalorder %s1246_s27, %s1580_s1 }
   0x8   :  { %p1252_p2 = pnand %p1250_p1, %p1247_p0 }
   0xa   :  { %1255 = shalt.err (!%p1252_p2)
}
   0xb   :  { %s1256_s8 = scalar_lea.vmem %s33_s22, 512  ;;  %p1261_p4 = scmp.lt.s32.totalorder %s33_s22, %s33_s22 }
   0xc   :  { %p1257_p3 = scmp.ne.s32.totalorder %s33_s22, %s1256_s8  ;;  %p1262_p5 = scmp.lt.s32.totalorder %s1256_s8, %s1256_s8 }
   0xe   :  { %p1263_p6 = por %p1262_p5, %p1261_p4 }
  0x10   :  { %p1264_p7 = pnand %p1263_p6, %p1257_p3 }
  0x12   :  { %1267 = shalt.err (!%p1264_p7)
}
  0x13   :  { %s1366_s9 = smov 128   ;;  %s1367_s10 = smov 8  }
  0x14   :  { %38 = dma.hbm_to_vmem [thread:$0]  %s1580_s1, 512, %s33_s22, [#allocation7], %s1366_s9, %s1366_s9, %s1367_s10  }
  0x15   :  { %s1268_s15 = scalar_lea.hbm %s1579_s0, 256 }
  0x16   :  { %p1269_p8 = scmp.ne.s32.totalorder %s1579_s0, %s1268_s15  ;;  %p1272_p9 = scmp.lt.u32.totalorder %s1268_s15, %s1579_s0 }
  0x18   :  { %p1274_p10 = pnand %p1272_p9, %p1269_p8 }
  0x1a   :  { %1277 = shalt.err (!%p1274_p10)
}
  0x1b   :  { %s1278_s20 = scalar_lea.vmem %s1414_s24, 256  ;;  %p1283_p12 = scmp.lt.s32.totalorder %s1414_s24, %s1414_s24 }
  0x1c   :  { %p1279_p11 = scmp.ne.s32.totalorder %s1414_s24, %s1278_s20  ;;  %p1284_p13 = scmp.lt.s32.totalorder %s1278_s20, %s1278_s20 }
  0x1e   :  { %p1285_p0 = por %p1284_p13, %p1283_p12 }
  0x20   :  { %p1286_p1 = pnand %p1285_p0, %p1279_p11 }
  0x22   :  { %1289 = shalt.err (!%p1286_p1)
}
  0x23   :  { %26 = dma.hbm_to_vmem [thread:$0]  %s1579_s0, 256, %s1414_s24, [#allocation4], %s1366_s9, %s1366_s9, %s1367_s10  }
  0x24   :  { %s1368_s22 = smov [#allocation8]   ;;  %s1369_s25 = smov [#allocation9]  }
  0x25   :  { %s44_s23 = sshll.u32 %s1368_s22, 4  ;;  %s58_s26 = sshll.u32 %s1369_s25, 4  ;;  %s45_s23 = int_to_ptr.vmem [resolvable:$true] %s44_s23  ;;  %s1451_s26 = int_to_ptr.vmem [resolvable:$true] %s58_s26 }
  0x26   :  { %s1290_s29 = scalar_lea.hbm %s1581_s2, 768 }
  0x27   :  { %p1291_p2 = scmp.ne.s32.totalorder %s1581_s2, %s1290_s29  ;;  %p1294_p3 = scmp.lt.u32.totalorder %s1290_s29, %s1581_s2 }
  0x29   :  { %p1296_p4 = pnand %p1294_p3, %p1291_p2 }
  0x2b   :  { %1299 = shalt.err (!%p1296_p4)
}
  0x2c   :  { %s1300_s0 = scalar_lea.vmem %s45_s23, 768  ;;  %p1305_p6 = scmp.lt.s32.totalorder %s45_s23, %s45_s23 }
  0x2d   :  { %p1301_p5 = scmp.ne.s32.totalorder %s45_s23, %s1300_s0  ;;  %p1306_p7 = scmp.lt.s32.totalorder %s1300_s0, %s1300_s0 }
  0x2f   :  { %p1307_p8 = por %p1306_p7, %p1305_p6 }
  0x31   :  { %p1308_p9 = pnand %p1307_p8, %p1301_p5 }
  0x33   :  { %1311 = shalt.err (!%p1308_p9)
}
  0x34   :  { %50 = dma.hbm_to_vmem [thread:$0]  %s1581_s2, 768, %s45_s23, [#allocation7], %s1366_s9, %s1366_s9, %s1367_s10  }
  0x35   :  { %s1312_s15 = scalar_lea.hbm %s1583_s4, 512 }
  0x36   :  { %p1313_p10 = scmp.ne.s32.totalorder %s1583_s4, %s1312_s15  ;;  %p1316_p11 = scmp.lt.u32.totalorder %s1312_s15, %s1583_s4 }
  0x38   :  { %p1318_p12 = pnand %p1316_p11, %p1313_p10 }
  0x3a   :  { %1321 = shalt.err (!%p1318_p12)
}
  0x3b   :  { %s1322_s20 = scalar_lea.vmem %s1451_s26, 512  ;;  %p1327_p0 = scmp.lt.s32.totalorder %s1451_s26, %s1451_s26 }
  0x3c   :  { %p1323_p13 = scmp.ne.s32.totalorder %s1451_s26, %s1322_s20  ;;  %p1328_p1 = scmp.lt.s32.totalorder %s1322_s20, %s1322_s20 }
  0x3e   :  { %p1329_p2 = por %p1328_p1, %p1327_p0 }
  0x40   :  { %p1330_p3 = pnand %p1329_p2, %p1323_p13 }
  0x42   :  { %1333 = shalt.err (!%p1330_p3)
}
  0x43   :  { %64 = dma.hbm_to_vmem [thread:$0]  %s1583_s4, 512, %s1451_s26, [#allocation10], %s1366_s9, %s1366_s9, %s1367_s10  }
  0x44   :  { %1356 = dma.done.wait [#allocation4], 256  }
  0x45   :  { %1357 = vsyncadd [#allocation4], 4294967040 }
  0x46   :  { %1358 = dma.done.wait [#allocation7], 1280  }
  0x47   :  { %1359 = vsyncadd [#allocation7], 4294966016 }
  0x48   :  { %1360 = dma.done.wait [#allocation10], 512  }
  0x49   :  { %1361 = vsyncadd [#allocation10], 4294966784  ;;  %vm85_vm0 = vcmask 261120   ;;  %v81_v0 = vld [vmem:[#allocation6] sm:$0xff]  ;;  %v82_v1 = vld [vmem:[#allocation6 + $0x8] sm:$0xff]  ;;  %vm180_vm1 = vcmask 392192  }
  0x4a   :  { %v83_v2 = vld [vmem:[#allocation6 + $0x10] sm:$0xff]  ;;  %v1187_v3 = vpack.c.bf16 %v82_v1, %v81_v0  ;;  %v84_v4 = vld [vmem:[#allocation6 + $0x18] sm:$0xff]  ;;  %v167_v7 = vld [vmem:[#allocation8] sm:$0xff]  ;;  %v1370_v19 = vmov 0.0   ;;  %vm1371_vm2 = vmmov 0   ;;  %s1372_s22 = smov 80  }
  0x4b   :  { %v79_v5 = vld [vmem:[#allocation3] sm:$0xff]  ;;  %v1191_v6 = vpack.c.bf16 %v84_v4, %v83_v2  ;;  %v168_v8 = vld [vmem:[#allocation8 + $0x8] sm:$0xff]  ;;  %v170_v11 = vld [vmem:[#allocation8 + $0x18] sm:$0xff]  ;;  %s1373_s23 = smov 96   ;;  %s1374_s25 = smov 112   ;;  %vm265_vm3 = vcmask 130048  }
  0x4c   :  { %1118 = vmatprep.mubr.msk.f32.mxu0 %vm85_vm0, %v79_v5  ;;  %v169_v9 = vld [vmem:[#allocation8 + $0x10] sm:$0xff]  ;;  %1188 = vmatprep.subr.bf16.mxu0 %v1187_v3  ;;  %v1195_v10 = vpack.c.bf16 %v168_v8, %v167_v7  ;;  %v171_v13 = vld [vmem:[#allocation8 + $0x20] sm:$0xff]  ;;  %v172_v14 = vld [vmem:[#allocation8 + $0x28] sm:$0xff]  ;;  %vm341_vm4 = vcmask 64512   ;;  %s1376_s26 = smov 48   ;;  %s1377_s27 = smov 16  }
  0x4d   :  { %1190 = vmatpush3.bf16.msra.mxu0 %v1187_v3  ;;  %v1199_v12 = vpack.c.bf16 %v170_v11, %v169_v9  ;;  %v1203_v15 = vpack.c.bf16 %v172_v14, %v171_v13  ;;  %v80_v16 = vld [vmem:[#allocation3 + $0x8] sm:$0xff]  ;;  %v1056_v20 = vld [vmem:[%s1582_s3] ss:$0 sm:$0xff]  ;;  %s1375_s3 = smov 64   ;;  %vm766_vm5 = vcmask 261248   ;;  %s1378_s30 = smov [#allocation11]  }
  0x4e   :  { %1192 = vmatprep.subr.bf16.mxu0 %v1191_v6  ;;  %1196 = vmatprep.subr.bf16.mxu1 %v1195_v10  ;;  %s1040_s7 = sshll.u32 %s1378_s30, 4  ;;  %s1041_s7 = int_to_ptr.vmem [resolvable:$true] %s1040_s7 }
  0x4f   :  { %1198 = vmatpush3.bf16.msra.mxu1 %v1195_v10  ;;  %s1334_s8 = scalar_lea.vmem %s1041_s7, 256  ;;  %p1339_p5 = scmp.lt.s32.totalorder %s1041_s7, %s1041_s7 }
  0x50   :  { %1200 = vmatprep.subr.bf16.mxu1 %v1199_v12  ;;  %p1335_p4 = scmp.ne.s32.totalorder %s1041_s7, %s1334_s8  ;;  %p1340_p6 = scmp.lt.s32.totalorder %s1334_s8, %s1334_s8 }
  0x51   :  { %1194 = vmatpush3.bf16.msra.mxu0 %v1191_v6 }
  0x52   :  { %1136 = vmatprep.subr.mxu0 %v1370_v19  ;;  %p1341_p7 = por %p1340_p6, %p1339_p5 }
  0x53   :  { %1202 = vmatpush3.bf16.msra.mxu1 %v1199_v12 }
  0x54   :  { %1119 = vmatmul.mubr.msk.f32.vlgmr.msra.gmra.mrb[0].mxu0 %vm85_vm0, %v80_v16  ;;  %1204 = vmatprep.subr.bf16.mxu1 %v1203_v15  ;;  %p1342_p8 = pnand %p1341_p7, %p1335_p4 }
  0x55   :  { %1138 = vmatprep.mubr.msk.f32.mxu0 %vm1371_vm2, %v1370_v19 }
  0x57   :  { %1206 = vmatpush3.bf16.msra.mxu1 %v1203_v15 }
  0x58   :  { %1146 = vmatprep.subr.mxu1 %v1370_v19 }
 0x127   :  { %v1120_v17 = vpop.f32.mrb[0].mxu0 }
 0x128   :  { %v158_v18 = vpop.f32.mrb[1].mxu0 }
 0x129   :  { %1133 = vmatprep.mubr.msk.f32.mxu1 %vm180_vm1, %v158_v18 }
 0x12a   :  { %1134 = vmatmul.mubr.msk.f32.vlgmr.msra.gmra.mrb[0].mxu1 %vm180_vm1, %v1120_v17 }
 0x12b   :  { %1148 = vmatprep.mubr.msk.f32.mxu1 %vm1371_vm2, %v1370_v19 }
 0x1fd   :  { %v1135_v21 = vpop.f32.mrb[0].mxu1 }
 0x1fe   :  { %v253_v22 = vpop.f32.mrb[1].mxu1  ;;  %v1503_v24 = vadd.f32 %v1135_v21, %v1056_v20  ;;  %v942_v21 = vld [vmem:[#allocation9 + $0x8] sm:$0xff] }
 0x1ff   :  { %v1499_v23 = vadd.f32 %v1056_v20, %v253_v22  ;;  %v941_v20 = vld [vmem:[#allocation9] sm:$0xff] }
 0x200   :  { %v1207_v22 = vpack.c.bf16 %v942_v21, %v941_v20 }
 0x201   :  { %598 = vrot.lane.b32.xlu1 %v1499_v23, %s1372_s22  ;;  %263 = vrot.lane.b32.xlu0 %v1499_v23, %s1373_s23 }
 0x205   :  { %596 = vrot.lane.b32.xlu1 %v1499_v23, %s1374_s25  ;;  %431 = vrot.lane.b32.xlu0 %v1503_v24, %s1373_s23 }
 0x209   :  { %768 = vrot.lane.b32.xlu1 %v1503_v24, %s1374_s25  ;;  %770 = vrot.lane.b32.xlu0 %v1503_v24, %s1372_s22 }
 0x273   :  { %v264_v25 = vpop.permute.xlu0 %263  ;;  %v599_v26 = vpop.permute.xlu1 %598 }
 0x274   :  { %1137 = vmatpush3.xpose.msk.msra.mxu0 %vm265_vm3, %v264_v25  ;;  %v944_v25 = vld [vmem:[#allocation9 + $0x18] sm:$0xff] }
 0x275   :  { %1141 = vmatprep.subr.mxu0 %v1370_v19 }
 0x277   :  { %1139 = vmatmul.mubr.msk.f32.vlgmr.msra.gmra.mrb[2].mxu0 %vm265_vm3, %v1499_v23  ;;  %v432_v27 = vpop.permute.xlu0 %431  ;;  %v597_v28 = vpop.permute.xlu1 %596 }
 0x278   :  { %1147 = vmatpush3.xpose.msk.msra.mxu1 %vm265_vm3, %v432_v27  ;;  %1143 = vmatprep.mubr.msk.f32.mxu0 %vm1371_vm2, %v1370_v19 }
 0x279   :  { %1156 = vmatprep.subr.mxu1 %v1370_v19 }
 0x27b   :  { %1149 = vmatmul.mubr.msk.f32.vlgmr.msra.gmra.mrb[2].mxu1 %vm265_vm3, %v1503_v24  ;;  %v771_v29 = vpop.permute.xlu0 %770  ;;  %v769_v30 = vpop.permute.xlu1 %768 }
 0x27c   :  { %1157 = vmatpush3.xpose.msk.msra.mxu1 %vm265_vm3, %v599_v26  ;;  %1158 = vmatprep.mubr.msk.f32.mxu1 %vm1371_vm2, %v1370_v19 }
 0x27d   :  { %1166 = vmatprep.subr.mxu1 %v1370_v19 }
 0x27f   :  { %1159 = vmatmul.mubr.msk.f32.vlgmr.msra.gmra.mrb[4].mxu1 %vm265_vm3, %v597_v28 }
 0x280   :  { %1167 = vmatpush3.xpose.msk.msra.mxu1 %vm265_vm3, %v771_v29  ;;  %1168 = vmatprep.mubr.msk.f32.mxu1 %vm1371_vm2, %v1370_v19 }
 0x281   :  { %1208 = vmatprep.subr.bf16.mxu1 %v1207_v22 }
 0x283   :  { %1169 = vmatmul.mubr.msk.f32.vlgmr.msra.gmra.mrb[6].mxu1 %vm265_vm3, %v769_v30 }
 0x284   :  { %1210 = vmatpush3.bf16.msra.mxu1 %v1207_v22 }
 0x34a   :  { %v336_v31 = vpop.f32.mrb[2].mxu0 }
 0x34b   :  { %v340_v32 = vmul.f32 0.25, %v336_v31  ;;  %v1140_v33 = vpop.f32.mrb[3].mxu0 }
 0x34d   :  { %v342_v34 = vsel %vm341_vm4, %v340_v32, -inf }
 0x34e   :  { %343 = vmax.xlane.f32.xlu0 %v342_v34  ;;  %v503_v35 = vpop.f32.mrb[2].mxu1 }
 0x34f   :  { %v507_v36 = vmul.f32 0.25, %v503_v35  ;;  %v1150_v37 = vpop.f32.mrb[3].mxu1 }
 0x350   :  { %v1071_v37 = vld [vmem:[%s1584_s5] ss:$0 sm:$0xff] }
 0x351   :  { %v508_v38 = vsel %vm341_vm4, %v507_v36, -inf }
 0x352   :  { %509 = vmax.xlane.f32.xlu1 %v508_v38  ;;  %v670_v39 = vpop.f32.mrb[4].mxu1 }
 0x353   :  { %v674_v40 = vmul.f32 0.25, %v670_v39  ;;  %v1160_v41 = vpop.f32.mrb[5].mxu1 }
 0x355   :  { %v675_v42 = vsel %vm341_vm4, %v674_v40, -inf }
 0x356   :  { %676 = vmax.xlane.f32.xlu0 %v675_v42  ;;  %v842_v43 = vpop.f32.mrb[6].mxu1 }
 0x357   :  { %v846_v44 = vmul.f32 0.25, %v842_v43  ;;  %v1170_v45 = vpop.f32.mrb[7].mxu1 }
 0x359   :  { %v847_v46 = vsel %vm341_vm4, %v846_v44, -inf }
 0x35a   :  { %848 = vmax.xlane.f32.xlu0 %v847_v46 }
 0x363   :  { %353 = vrot.lane.b32.xlu1 %v1499_v23, %s1375_s3 }
 0x3db   :  { %v344_v47 = vpop.xlane.xlu0 %343 }
 0x3dc   :  { %v345_v48 = vsub.f32 %v340_v32, %v344_v47 }
 0x3de   :  { %v346_v49 = vmul.f32 1.442695, %v345_v48 }
 0x3df   :  { %v510_v50 = vpop.xlane.xlu1 %509 }
 0x3e0   :  { %1230 = vpow2.f32 %v346_v49  ;;  %v511_v51 = vsub.f32 %v507_v36, %v510_v50 }
 0x3e2   :  { %v512_v52 = vmul.f32 1.442695, %v511_v51 }
 0x3e3   :  { %v354_v53 = vpop.permute.xlu1 %353  ;;  %v677_v54 = vpop.xlane.xlu0 %676 }
 0x3e4   :  { %1232 = vpow2.f32 %v512_v52  ;;  %v678_v55 = vsub.f32 %v674_v40, %v677_v54  ;;  %1142 = vmatpush3.msra.mxu0 %v354_v53 }
 0x3e5   :  { %1151 = vmatprep.subr.mxu0 %v1370_v19 }
 0x3e6   :  { %v679_v56 = vmul.f32 1.442695, %v678_v55 }
 0x3e7   :  { %v849_v57 = vpop.xlane.xlu0 %848 }
 0x3e8   :  { %1234 = vpow2.f32 %v679_v56  ;;  %v850_v58 = vsub.f32 %v846_v44, %v849_v57 }
 0x3ea   :  { %v1231_v59 = vpop.eup %1230  ;;  %v851_v60 = vmul.f32 1.442695, %v850_v58 }
 0x3eb   :  { %v348_v61 = vsel %vm341_vm4, %v1231_v59, 0.0 }
 0x3ec   :  { %1236 = vpow2.f32 %v851_v60  ;;  %349 = vadd.xlane.f32.xlu1 %v348_v61 }
 0x3ee   :  { %v1233_v62 = vpop.eup %1232 }
 0x3ef   :  { %v514_v63 = vsel %vm341_vm4, %v1233_v62, 0.0 }
 0x3f0   :  { %515 = vadd.xlane.f32.xlu0 %v514_v63 }
 0x3f2   :  { %v1235_v0 = vpop.eup %1234 }
 0x3f3   :  { %v681_v1 = vsel %vm341_vm4, %v1235_v0, 0.0 }
 0x3f4   :  { %682 = vadd.xlane.f32.xlu1 %v681_v1 }
 0x3f6   :  { %v1237_v2 = vpop.eup %1236 }
 0x3f7   :  { %v853_v3 = vsel %vm341_vm4, %v1237_v2, 0.0 }
 0x3f8   :  { %854 = vadd.xlane.f32.xlu0 %v853_v3 }
 0x405   :  { %686 = vrot.lane.b32.xlu1 %v1499_v23, %s1376_s26 }
 0x409   :  { %858 = vrot.lane.b32.xlu1 %v1503_v24, %s1376_s26 }
 0x40e   :  { %519 = vrot.lane.b32.xlu0 %v1503_v24, %s1375_s3  ;;  %v943_v24 = vld [vmem:[#allocation9 + $0x10] sm:$0xff] }
 0x40f   :  { %v1211_v27 = vpack.c.bf16 %v944_v25, %v943_v24 }
 0x411   :  { %1212 = vmatprep.subr.bf16.mxu1 %v1211_v27 }
 0x412   :  { %1214 = vmatpush3.bf16.msra.mxu1 %v1211_v27 }
 0x479   :  { %v350_v4 = vpop.xlane.xlu1 %349 }
 0x47a   :  { %1238 = vrcp.f32 %v350_v4 }
 0x47d   :  { %v516_v5 = vpop.xlane.xlu0 %515 }
 0x47e   :  { %1240 = vrcp.f32 %v516_v5 }
 0x481   :  { %v683_v6 = vpop.xlane.xlu1 %682 }
 0x482   :  { %1242 = vrcp.f32 %v683_v6 }
 0x484   :  { %v1239_v7 = vpop.eup %1238 }
 0x485   :  { %v352_v8 = vmul.f32 %v1239_v7, %v1231_v59  ;;  %v855_v9 = vpop.xlane.xlu0 %854  ;;  %v687_v12 = vpop.permute.xlu1 %686 }
 0x486   :  { %1244 = vrcp.f32 %v855_v9 }
 0x487   :  { %1144 = vmatmul.mubr.msk.f32.vlgmr.msra.gmra.mrb[4].mxu0 %vm341_vm4, %v352_v8 }
 0x488   :  { %v1241_v10 = vpop.eup %1240  ;;  %1153 = vmatprep.mubr.msk.f32.mxu0 %vm1371_vm2, %v1370_v19 }
 0x489   :  { %v518_v11 = vmul.f32 %v1241_v10, %v1233_v62  ;;  %v520_v13 = vpop.permute.xlu0 %519  ;;  %v859_v16 = vpop.permute.xlu1 %858 }
 0x48a   :  { %1152 = vmatpush3.msra.mxu0 %v520_v13 }
 0x48b   :  { %1154 = vmatmul.mubr.msk.f32.vlgmr.msra.gmra.mrb[6].mxu0 %vm341_vm4, %v518_v11  ;;  %1161 = vmatprep.subr.mxu0 %v1370_v19 }
 0x48c   :  { %v1243_v14 = vpop.eup %1242  ;;  %1162 = vmatpush3.msra.mxu0 %v687_v12  ;;  %1163 = vmatprep.mubr.msk.f32.mxu0 %vm1371_vm2, %v1370_v19 }
 0x48d   :  { %v685_v15 = vmul.f32 %v1243_v14, %v1235_v0  ;;  %1171 = vmatprep.subr.mxu0 %v1370_v19 }
 0x48f   :  { %1164 = vmatmul.mubr.msk.f32.vlgmr.msra.gmra.mrb[8].mxu0 %vm341_vm4, %v685_v15 }
 0x490   :  { %v1245_v17 = vpop.eup %1244  ;;  %1172 = vmatpush3.msra.mxu0 %v859_v16  ;;  %1173 = vmatprep.mubr.msk.f32.mxu0 %vm1371_vm2, %v1370_v19 }
 0x491   :  { %v857_v18 = vmul.f32 %v1245_v17, %v1237_v2 }
 0x493   :  { %1174 = vmatmul.mubr.msk.f32.vlgmr.msra.gmra.mrb[10].mxu0 %vm341_vm4, %v857_v18 }
 0x55a   :  { %v425_v23 = vpop.f32.mrb[4].mxu0 }
 0x55b   :  { %429 = vst.msk [vmem:[#allocation2] sm:$0xff] %vm265_vm3, %v425_v23  ;;  %v1145_v26 = vpop.f32.mrb[5].mxu0 }
 0x55e   :  { %v591_v28 = vpop.f32.mrb[6].mxu0 }
 0x55f   :  { %595 = vst.msk [vmem:[#allocation2 + $0x8] sm:$0xff] %vm265_vm3, %v591_v28  ;;  %v1155_v19 = vpop.f32.mrb[7].mxu0 }
 0x562   :  { %v758_v29 = vpop.f32.mrb[8].mxu0 }
 0x563   :  { %763 = vrot.lane.b32.xlu0 %v758_v29, %s1377_s27  ;;  %v1165_v30 = vpop.f32.mrb[9].mxu0 }
 0x566   :  { %v930_v31 = vpop.f32.mrb[10].mxu0 }
 0x567   :  { %935 = vrot.lane.b32.xlu1 %v930_v31, %s1377_s27  ;;  %v1175_v32 = vpop.f32.mrb[11].mxu0 }
 0x5d5   :  { %v764_v33 = vpop.permute.xlu0 %763 }
 0x5d6   :  { %767 = vst.msk [vmem:[#allocation2] sm:$0xff] %vm766_vm5, %v764_v33 }
 0x5d9   :  { %v936_v34 = vpop.permute.xlu1 %935 }
 0x5da   :  { %938 = vst.msk [vmem:[#allocation2 + $0x8] sm:$0xff] %vm766_vm5, %v936_v34 }
 0x5dd   :  { %v939_v35 = vld [vmem:[#allocation2] sm:$0xff] }
 0x5de   :  { %1184 = vmatprep.mubr.msk.f32.mxu1 %vm85_vm0, %v939_v35 }
 0x5e1   :  { %v940_v36 = vld [vmem:[#allocation2 + $0x8] sm:$0xff] }
 0x5e2   :  { %1185 = vmatmul.mubr.msk.f32.vlgmr.msra.gmra.mrb[8].mxu1 %vm85_vm0, %v940_v36 }
 0x6b5   :  { %v1186_v38 = vpop.f32.mrb[8].mxu1 }
 0x6b6   :  { %v1030_v39 = vadd.f32 %v1186_v38, %v1071_v37  ;;  %v1024_v40 = vpop.f32.mrb[9].mxu1 }
 0x6b7   :  { %v1025_v41 = vadd.f32 %v1071_v37, %v1024_v40 }
 0x6b8   :  { %1034 = vst.msk [vmem:[#allocation11 + $0x8] sm:$0xff] %vm85_vm0, %v1030_v39 }
 0x6b9   :  { %1033 = vst.msk [vmem:[#allocation11] sm:$0xff] %vm85_vm0, %v1025_v41 }
 0x6ba   :  { %1345 = shalt.err (!%p1342_p8)
}
 0x6bb   :  { %s1346_s0 = scalar_lea.hbm %s1585_s6, 256 }
 0x6bc   :  { %p1347_p9 = scmp.ne.s32.totalorder %s1585_s6, %s1346_s0  ;;  %p1350_p10 = scmp.lt.u32.totalorder %s1346_s0, %s1585_s6 }
 0x6be   :  { %p1352_p11 = pnand %p1350_p10, %p1347_p9 }
 0x6c0   :  { %1355 = shalt.err (!%p1352_p11)
}
 0x6c1   :  { %1046 = dma.vmem_to_hbm [thread:$0]  %s1041_s7, 256, %s1585_s6, [#allocation5], %s1366_s9, %s1366_s9, %s1367_s10  }
 0x6c2   :  { %1362 = dma.done.wait [#allocation5], 256  }
 0x6c3   :  { %1363 = vsyncadd [#allocation5], 4294967040 }
 0x6c4   :  { %1050 = vsyncpa [#allocation4], 1 }
 0x6c5   :  { %1051 = vsyncpa [#allocation7], 1 }
 0x6c6   :  { %1052 = vsyncpa [#allocation10], 1 }
 0x6c7   :  { %1053 = vsyncpa [#allocation5], 1 }

</bundles_post_ra>
